<compile_context>
chip_gen: v5e
topology: v5e:2x2
jax: 0.10.0
libtpu: 0.0.40
codegen_flags: <defaults>
</compile_context>

<pallas_src>
import functools

import jax
import jax.numpy as jnp
from jax.experimental import pallas as pl
from jax.experimental.pallas import tpu as pltpu


def flow_step_fwd_kernel(xT_ref, wT_ref, bT_ref, w1_ref, b1_ref,
                         w2_ref, b2_ref, wz_ref, bz_ref,
                         zT_ref, ld_ref, *, half):
    xT = xT_ref[...]                                               # (D, tB) f32

    # ActNorm + InvertibleConv fused into one affine map (single MXU matmul):
    #   z1^T = Wf^T @ x^T + bf^T
    z1 = jnp.dot(wT_ref[...], xT, preferred_element_type=jnp.float32) + bT_ref[...]

    x_a = z1[:half, :]                                             # (D/2, tB)
    x_b = z1[half:, :]                                             # (D/2, tB)

    # AffineCoupling s_t MLP in channels-major form:
    #   h^T = relu(W1 @ x_a^T + b1), ... (weights in natural (out,in) layout,
    #   so every contraction is a plain row-major MXU matmul).
    h = jnp.dot(w1_ref[...], x_a, preferred_element_type=jnp.float32) + b1_ref[...]
    h = jnp.maximum(h, 0.0)
    h = jnp.dot(w2_ref[...], h, preferred_element_type=jnp.float32) + b2_ref[...]
    h = jnp.maximum(h, 0.0)
    st = jnp.dot(wz_ref[...], h, preferred_element_type=jnp.float32) + bz_ref[...]

    log_s = st[:half, :]
    t = st[half:, :]

    # Stable sigmoid + log-sigmoid sharing one EUP exp:
    #   s = 1/(1+e),  log(s) = -log(1+e),  e = exp(-(log_s + 2))
    e = jnp.exp(-(log_s + 2.0))
    denom = 1.0 + e
    s = 1.0 / denom
    z_b = (x_b + t) * s

    # Single lane-dense store of the full output block (no masked partial
    # stores; concat is along the sublane axis at an aligned boundary).
    zT_ref[...] = jnp.concatenate([x_a, z_b], axis=0).astype(zT_ref.dtype)

    # Per-sample coupling log-det as a lane-dense (8, tB) block: sublane-sum
    # then a cheap sublane broadcast keeps the store fully unmasked.
    ld_row = -jnp.sum(jnp.log(denom), axis=0, keepdims=True)       # (1, tB)
    ld_ref[...] = jnp.broadcast_to(ld_row, ld_ref.shape).astype(ld_ref.dtype)


def flow_step_forward(x, params, *, batch_tile=512):
    """FlowStep forward (reverse=False). Returns (z, log_det)."""
    B, D = x.shape
    half = D // 2
    M = params["W1"].shape[0]
    f32 = jnp.float32
    LANES = 128

    # ---- choose a lane-aligned batch tile; pad ragged batches ----
    B_pad = ((B + LANES - 1) // LANES) * LANES
    bt = min(batch_tile, B_pad)
    bt = max(LANES, (bt // LANES) * LANES)
    B_pad = ((B_pad + bt - 1) // bt) * bt
    num_tiles = B_pad // bt
    # v7x megacore: prefer >= 2 "parallel" grid steps when the batch allows,
    # without dropping below 256-row tiles (single-TC v5e/v6e: bigger is fine).
    if num_tiles == 1 and bt >= 512 and bt % 256 == 0:
        bt //= 2
        num_tiles = 2

    # ---- grid-invariant parameter prep (done once per call in XLA) ----
    shift = params["shift"].astype(f32).reshape(1, D)
    scale = params["scale"].astype(f32).reshape(1, D)

    # InvertibleConv weight W = perm @ (lower*mask.T + I) @ (upper*mask + diag(exp(logs)*sign)).
    mask = jnp.triu(jnp.ones((D, D), f32), k=1)
    eye = jnp.eye(D, dtype=f32)
    lower = params["lower"].astype(f32) * mask.T + eye
    upper = (params["upper"].astype(f32) * mask
             + jnp.diag(jnp.exp(params["logs"].astype(f32))
                        * params["s_sign"].astype(f32)))
    w_conv = params["perm"].astype(f32) @ lower @ upper            # (D, D)

    # Fold ActNorm into the conv matmul: ((x+shift)*scale) @ W = x @ Wf + bf,
    # then transpose for the channels-major kernel: z1^T = Wf^T @ x^T + bf^T.
    w_fused_T = (scale.reshape(D, 1) * w_conv).T                   # (D, D)
    b_fused_T = ((shift * scale) @ w_conv).reshape(D, 1)           # (D, 1)

    # MLP weights in natural (out, in) orientation; fold ZeroLinear's
    # exp(3*scale) output gain into its weight and bias.
    w1 = params["W1"].astype(f32)                                  # (M, D/2)
    b1 = params["b1"].astype(f32).reshape(M, 1)
    w2 = params["W2"].astype(f32)                                  # (M, M)
    b2 = params["b2"].astype(f32).reshape(M, 1)
    gain = jnp.exp(3.0 * params["scale_z"].astype(f32)).reshape(D, 1)
    wz = params["Wz"].astype(f32) * gain                           # (D, M)
    bz = params["bz"].astype(f32).reshape(D, 1) * gain             # (D, 1)

    const_logdet = (jnp.sum(jnp.log(jnp.abs(scale)))               # ActNorm
                    + jnp.sum(params["logs"].astype(f32)))         # InvertibleConv

    # ---- layout plumbing: pad + transpose to channels-major (D, B_pad) ----
    x_p = x.astype(f32)
    if B_pad != B:
        x_p = jnp.pad(x_p, ((0, B_pad - B), (0, 0)))
    xT = x_p.T                                                     # (D, B_pad)

    kernel = functools.partial(flow_step_fwd_kernel, half=half)
    rep = lambda b: (0, 0)   # grid-invariant blocks: Pallas elides the re-DMA

    zT, ld8 = pl.pallas_call(
        kernel,
        out_shape=(jax.ShapeDtypeStruct((D, B_pad), f32),
                   jax.ShapeDtypeStruct((8, B_pad), f32)),
        grid=(num_tiles,),
        in_specs=[
            pl.BlockSpec((D, bt), lambda b: (0, b)),               # x^T
            pl.BlockSpec((D, D), rep),                             # Wf^T
            pl.BlockSpec((D, 1), rep),                             # bf^T
            pl.BlockSpec((M, half), rep),                          # W1
            pl.BlockSpec((M, 1), rep),                             # b1
            pl.BlockSpec((M, M), rep),                             # W2
            pl.BlockSpec((M, 1), rep),                             # b2
            pl.BlockSpec((D, M), rep),                             # Wz (scaled)
            pl.BlockSpec((D, 1), rep),                             # bz (scaled)
        ],
        out_specs=(pl.BlockSpec((D, bt), lambda b: (0, b)),        # z^T
                   pl.BlockSpec((8, bt), lambda b: (0, b))),       # log-det rows
        compiler_params=pltpu.CompilerParams(
            dimension_semantics=("parallel",)),
    )(xT, w_fused_T, b_fused_T, w1, b1, w2, b2, wz, bz)

    z = zT.T[:B]                                                   # (B, D)
    log_det = ld8[0, :B] + const_logdet                            # (B,)
    return z, log_det


def flow_step_reference(x, params):
    """Pure-JAX mirror of the PyTorch FlowStep.forward(x, reverse=False)."""
    f32 = jnp.float32
    x = x.astype(f32)
    B, D = x.shape
    half = D // 2

    # ActNorm
    z = (x + params["shift"].reshape(1, D)) * params["scale"].reshape(1, D)
    ld = jnp.sum(jnp.log(jnp.abs(params["scale"])))

    # InvertibleConv
    mask = jnp.triu(jnp.ones((D, D), f32), k=1)
    eye = jnp.eye(D, dtype=f32)
    lower = params["lower"] * mask.T + eye
    upper = params["upper"] * mask + jnp.diag(jnp.exp(params["logs"]) * params["s_sign"])
    w = params["perm"] @ lower @ upper
    z = z @ w
    ld = ld + jnp.sum(params["logs"])

    # AffineCoupling
    x_a, x_b = z[:, :half], z[:, half:]
    h = jax.nn.relu(x_a @ params["W1"].T + params["b1"])
    h = jax.nn.relu(h @ params["W2"].T + params["b2"])
    out = (h @ params["Wz"].T + params["bz"]) * jnp.exp(3.0 * params["scale_z"])
    log_s, t = out[:, :half], out[:, half:]
    s = jax.nn.sigmoid(log_s + 2.0)
    ld2 = jnp.sum(jnp.log(s), axis=1)
    x_b = (x_b + t) * s
    z = jnp.concatenate([x_a, x_b], axis=1)
    return z, ld + ld2


if __name__ == "__main__":
    D, M = 16, 32                    # in_channels, mid_channels
    key = jax.random.PRNGKey(0)
    keys = jax.random.split(key, 12)

    # ActNorm parameters (treated as already initialized / trained).
    shift = 0.1 * jax.random.normal(keys[1], (1, D), jnp.float32)
    scale = 1.0 + 0.1 * jax.random.normal(keys[2], (1, D), jnp.float32)

    # InvertibleConv LU-style parameters (synthetic, well-conditioned).
    perm = jnp.eye(D, dtype=jnp.float32)[jax.random.permutation(keys[3], D)]
    lower = 0.2 * jax.random.normal(keys[4], (D, D), jnp.float32)
    upper = 0.2 * jax.random.normal(keys[5], (D, D), jnp.float32)
    logs = 0.1 * jax.random.normal(keys[6], (D,), jnp.float32)
    s_sign = jnp.where(jax.random.normal(keys[7], (D,)) >= 0, 1.0, -1.0).astype(jnp.float32)

    # AffineCoupling s_t MLP ("trained" non-zero ZeroLinear for a non-trivial test).
    W1 = 0.3 * jax.random.normal(keys[8], (M, D // 2), jnp.float32)
    b1 = 0.1 * jax.random.normal(keys[9], (M,), jnp.float32)
    W2 = 0.3 * jax.random.normal(keys[10], (M, M), jnp.float32)
    b2 = jnp.zeros((M,), jnp.float32)
    kz1, kz2, kz3 = jax.random.split(keys[11], 3)
    Wz = 0.3 * jax.random.normal(kz1, (D, M), jnp.float32)
    bz = 0.1 * jax.random.normal(kz2, (D,), jnp.float32)
    scale_z = 0.1 * jax.random.normal(kz3, (1, D), jnp.float32)

    params = dict(shift=shift, scale=scale, perm=perm, lower=lower, upper=upper,
                  logs=logs, s_sign=s_sign, W1=W1, b1=b1, W2=W2, b2=b2,
                  Wz=Wz, bz=bz, scale_z=scale_z)

    # Case 1: batch large enough for multiple parallel grid steps (tile=512, 2 steps).
    # Case 2: small ragged batch -> padded to one 128-row lane-aligned tile.
    for B in (1024, 100):
        x = jax.random.normal(jax.random.fold_in(keys[0], B), (B, D), jnp.float32)

        z, log_det = flow_step_forward(x, params, batch_tile=512)
        z = jax.block_until_ready(z)
        log_det = jax.block_until_ready(log_det)

        z_ref, ld_ref = flow_step_reference(x, params)

        assert z.shape == (B, D) and log_det.shape == (B,)
        # f32 end-to-end; small slack for MXU accumulation-order differences.
        assert jnp.allclose(z, z_ref, atol=5e-4, rtol=5e-4), \
            f"B={B}: z max abs err {jnp.max(jnp.abs(z - z_ref))}"
        assert jnp.allclose(log_det, ld_ref, atol=5e-4, rtol=5e-4), \
            f"B={B}: log_det max abs err {jnp.max(jnp.abs(log_det - ld_ref))}"

    print("KERNEL_OK")
</pallas_src>

<mosaic_0001>
module attributes {stable_mosaic.version = 11 : i64} {
  func.func @flow_step_fwd_kernel(%arg0: i32, %arg1: memref<16x512xf32, #tpu.memory_space<vmem>>, %arg2: memref<16x16xf32, #tpu.memory_space<vmem>>, %arg3: memref<16x1xf32, #tpu.memory_space<vmem>>, %arg4: memref<32x8xf32, #tpu.memory_space<vmem>>, %arg5: memref<32x1xf32, #tpu.memory_space<vmem>>, %arg6: memref<32x32xf32, #tpu.memory_space<vmem>>, %arg7: memref<32x1xf32, #tpu.memory_space<vmem>>, %arg8: memref<16x32xf32, #tpu.memory_space<vmem>>, %arg9: memref<16x1xf32, #tpu.memory_space<vmem>>, %arg10: memref<16x512xf32, #tpu.memory_space<vmem>>, %arg11: memref<8x512xf32, #tpu.memory_space<vmem>>) attributes {dimension_semantics = [#tpu.dimension_semantics<parallel>], iteration_bounds = array<i64: 2>, scalar_prefetch = 0 : i64, scratch_operands = 0 : i64, tpu.core_type = #tpu.core_type<tc>, window_params = [{transform_indices = @transform_0, window_bounds = array<i64: 16, 512>}, {pipeline_mode = #tpu.pipeline_mode<synchronous>, transform_indices = @transform_1, window_bounds = array<i64: 16, 16>}, {pipeline_mode = #tpu.pipeline_mode<synchronous>, transform_indices = @transform_2, window_bounds = array<i64: 16, 1>}, {pipeline_mode = #tpu.pipeline_mode<synchronous>, transform_indices = @transform_3, window_bounds = array<i64: 32, 8>}, {pipeline_mode = #tpu.pipeline_mode<synchronous>, transform_indices = @transform_4, window_bounds = array<i64: 32, 1>}, {pipeline_mode = #tpu.pipeline_mode<synchronous>, transform_indices = @transform_5, window_bounds = array<i64: 32, 32>}, {pipeline_mode = #tpu.pipeline_mode<synchronous>, transform_indices = @transform_6, window_bounds = array<i64: 32, 1>}, {pipeline_mode = #tpu.pipeline_mode<synchronous>, transform_indices = @transform_7, window_bounds = array<i64: 16, 32>}, {pipeline_mode = #tpu.pipeline_mode<synchronous>, transform_indices = @transform_8, window_bounds = array<i64: 16, 1>}, {transform_indices = @transform_9, window_bounds = array<i64: 16, 512>}, {transform_indices = @transform_10, window_bounds = array<i64: 8, 512>}]} {
    %c0 = arith.constant 0 : index
    %c0_0 = arith.constant 0 : index
    %0 = vector.load %arg1[%c0, %c0_0] : memref<16x512xf32, #tpu.memory_space<vmem>>, vector<16x512xf32>
    %c0_1 = arith.constant 0 : index
    %c0_2 = arith.constant 0 : index
    %1 = vector.load %arg2[%c0_1, %c0_2] : memref<16x16xf32, #tpu.memory_space<vmem>>, vector<16x16xf32>
    %cst = arith.constant dense<0.000000e+00> : vector<16x512xf32>
    %2 = tpu.matmul %1, %0, %cst {dimension_numbers = #tpu.dot_dimension_numbers<[1], [0], [0], [1], [0, 0, 1, 1], [], []>} : vector<16x16xf32>, vector<16x512xf32>, vector<16x512xf32> -> vector<16x512xf32>
    %c0_3 = arith.constant 0 : index
    %c0_4 = arith.constant 0 : index
    %3 = vector.load %arg3[%c0_3, %c0_4] : memref<16x1xf32, #tpu.memory_space<vmem>>, vector<16x1xf32>
    %4 = vector.broadcast %3 : vector<16x1xf32> to vector<16x512xf32>
    %5 = arith.addf %2, %4 : vector<16x512xf32>
    %6 = vector.extract_strided_slice %5 {offsets = [0, 0], sizes = [8, 512], strides = [1, 1]} : vector<16x512xf32> to vector<8x512xf32>
    %7 = vector.extract_strided_slice %5 {offsets = [8, 0], sizes = [8, 512], strides = [1, 1]} : vector<16x512xf32> to vector<8x512xf32>
    %c0_5 = arith.constant 0 : index
    %c0_6 = arith.constant 0 : index
    %8 = vector.load %arg4[%c0_5, %c0_6] : memref<32x8xf32, #tpu.memory_space<vmem>>, vector<32x8xf32>
    %cst_7 = arith.constant dense<0.000000e+00> : vector<32x512xf32>
    %9 = tpu.matmul %8, %6, %cst_7 {dimension_numbers = #tpu.dot_dimension_numbers<[1], [0], [0], [1], [0, 0, 1, 1], [], []>} : vector<32x8xf32>, vector<8x512xf32>, vector<32x512xf32> -> vector<32x512xf32>
    %c0_8 = arith.constant 0 : index
    %c0_9 = arith.constant 0 : index
    %10 = vector.load %arg5[%c0_8, %c0_9] : memref<32x1xf32, #tpu.memory_space<vmem>>, vector<32x1xf32>
    %11 = vector.broadcast %10 : vector<32x1xf32> to vector<32x512xf32>
    %12 = arith.addf %9, %11 : vector<32x512xf32>
    %cst_10 = arith.constant 0.000000e+00 : f32
    %13 = vector.broadcast %cst_10 : f32 to vector<32x512xf32>
    %14 = arith.maximumf %12, %13 : vector<32x512xf32>
    %c0_11 = arith.constant 0 : index
    %c0_12 = arith.constant 0 : index
    %15 = vector.load %arg6[%c0_11, %c0_12] : memref<32x32xf32, #tpu.memory_space<vmem>>, vector<32x32xf32>
    %cst_13 = arith.constant dense<0.000000e+00> : vector<32x512xf32>
    %16 = tpu.matmul %15, %14, %cst_13 {dimension_numbers = #tpu.dot_dimension_numbers<[1], [0], [0], [1], [0, 0, 1, 1], [], []>} : vector<32x32xf32>, vector<32x512xf32>, vector<32x512xf32> -> vector<32x512xf32>
    %c0_14 = arith.constant 0 : index
    %c0_15 = arith.constant 0 : index
    %17 = vector.load %arg7[%c0_14, %c0_15] : memref<32x1xf32, #tpu.memory_space<vmem>>, vector<32x1xf32>
    %18 = vector.broadcast %17 : vector<32x1xf32> to vector<32x512xf32>
    %19 = arith.addf %16, %18 : vector<32x512xf32>
    %cst_16 = arith.constant 0.000000e+00 : f32
    %20 = vector.broadcast %cst_16 : f32 to vector<32x512xf32>
    %21 = arith.maximumf %19, %20 : vector<32x512xf32>
    %c0_17 = arith.constant 0 : index
    %c0_18 = arith.constant 0 : index
    %22 = vector.load %arg8[%c0_17, %c0_18] : memref<16x32xf32, #tpu.memory_space<vmem>>, vector<16x32xf32>
    %cst_19 = arith.constant dense<0.000000e+00> : vector<16x512xf32>
    %23 = tpu.matmul %22, %21, %cst_19 {dimension_numbers = #tpu.dot_dimension_numbers<[1], [0], [0], [1], [0, 0, 1, 1], [], []>} : vector<16x32xf32>, vector<32x512xf32>, vector<16x512xf32> -> vector<16x512xf32>
    %c0_20 = arith.constant 0 : index
    %c0_21 = arith.constant 0 : index
    %24 = vector.load %arg9[%c0_20, %c0_21] : memref<16x1xf32, #tpu.memory_space<vmem>>, vector<16x1xf32>
    %25 = vector.broadcast %24 : vector<16x1xf32> to vector<16x512xf32>
    %26 = arith.addf %23, %25 : vector<16x512xf32>
    %27 = vector.extract_strided_slice %26 {offsets = [0, 0], sizes = [8, 512], strides = [1, 1]} : vector<16x512xf32> to vector<8x512xf32>
    %28 = vector.extract_strided_slice %26 {offsets = [8, 0], sizes = [8, 512], strides = [1, 1]} : vector<16x512xf32> to vector<8x512xf32>
    %cst_22 = arith.constant 2.000000e+00 : f32
    %29 = vector.broadcast %cst_22 : f32 to vector<8x512xf32>
    %30 = arith.addf %27, %29 : vector<8x512xf32>
    %cst_23 = arith.constant 0.000000e+00 : f32
    %31 = vector.broadcast %cst_23 : f32 to vector<8x512xf32>
    %32 = arith.subf %31, %30 : vector<8x512xf32>
    %33 = math.exp %32 : vector<8x512xf32>
    %cst_24 = arith.constant 1.000000e+00 : f32
    %34 = vector.broadcast %cst_24 : f32 to vector<8x512xf32>
    %35 = arith.addf %34, %33 : vector<8x512xf32>
    %cst_25 = arith.constant 1.000000e+00 : f32
    %36 = vector.broadcast %cst_25 : f32 to vector<8x512xf32>
    %37 = arith.divf %36, %35 : vector<8x512xf32>
    %38 = arith.addf %7, %28 : vector<8x512xf32>
    %39 = arith.mulf %38, %37 : vector<8x512xf32>
    %40 = tpu.concatenate %6, %39 in 0 : vector<8x512xf32>, vector<8x512xf32> -> vector<16x512xf32>
    %c0_26 = arith.constant 0 : index
    %c0_27 = arith.constant 0 : index
    %41 = vector.load %arg10[%c0_26, %c0_27] : memref<16x512xf32, #tpu.memory_space<vmem>>, vector<16x512xf32>
    tpu.vector_store %arg10[%c0_26, %c0_27], %40 {strides = array<i32>} : memref<16x512xf32, #tpu.memory_space<vmem>>, vector<16x512xf32>,
    %42 = math.log %35 : vector<8x512xf32>
    %cst_28 = arith.constant dense<0.000000e+00> : vector<512xf32>
    %43 = vector.multi_reduction <add>, %42, %cst_28 [0] : vector<8x512xf32> to vector<512xf32>
    %44 = vector.shape_cast %43 : vector<512xf32> to vector<1x512xf32>
    %cst_29 = arith.constant 0.000000e+00 : f32
    %45 = vector.broadcast %cst_29 : f32 to vector<1x512xf32>
    %46 = arith.subf %45, %44 : vector<1x512xf32>
    %47 = vector.shape_cast %46 : vector<1x512xf32> to vector<1x512xf32>
    %48 = vector.broadcast %47 : vector<1x512xf32> to vector<8x512xf32>
    %c0_30 = arith.constant 0 : index
    %c0_31 = arith.constant 0 : index
    %49 = vector.load %arg11[%c0_30, %c0_31] : memref<8x512xf32, #tpu.memory_space<vmem>>, vector<8x512xf32>
    tpu.vector_store %arg11[%c0_30, %c0_31], %48 {strides = array<i32>} : memref<8x512xf32, #tpu.memory_space<vmem>>, vector<8x512xf32>,
    return
  }
  func.func @transform_0(%arg0: i32) -> (i32, i32) {
    %c0_i32 = arith.constant 0 : i32
    %c0_i32_0 = arith.constant 0 : i32
    return %c0_i32, %arg0 : i32, i32
  }
  func.func @transform_1(%arg0: i32) -> (i32, i32) {
    %c0_i32 = arith.constant 0 : i32
    %c0_i32_0 = arith.constant 0 : i32
    %c0_i32_1 = arith.constant 0 : i32
    return %c0_i32, %c0_i32_0 : i32, i32
  }
  func.func @transform_2(%arg0: i32) -> (i32, i32) {
    %c0_i32 = arith.constant 0 : i32
    %c0_i32_0 = arith.constant 0 : i32
    %c0_i32_1 = arith.constant 0 : i32
    return %c0_i32, %c0_i32_0 : i32, i32
  }
  func.func @transform_3(%arg0: i32) -> (i32, i32) {
    %c0_i32 = arith.constant 0 : i32
    %c0_i32_0 = arith.constant 0 : i32
    %c0_i32_1 = arith.constant 0 : i32
    return %c0_i32, %c0_i32_0 : i32, i32
  }
  func.func @transform_4(%arg0: i32) -> (i32, i32) {
    %c0_i32 = arith.constant 0 : i32
    %c0_i32_0 = arith.constant 0 : i32
    %c0_i32_1 = arith.constant 0 : i32
    return %c0_i32, %c0_i32_0 : i32, i32
  }
  func.func @transform_5(%arg0: i32) -> (i32, i32) {
    %c0_i32 = arith.constant 0 : i32
    %c0_i32_0 = arith.constant 0 : i32
    %c0_i32_1 = arith.constant 0 : i32
    return %c0_i32, %c0_i32_0 : i32, i32
  }
  func.func @transform_6(%arg0: i32) -> (i32, i32) {
    %c0_i32 = arith.constant 0 : i32
    %c0_i32_0 = arith.constant 0 : i32
    %c0_i32_1 = arith.constant 0 : i32
    return %c0_i32, %c0_i32_0 : i32, i32
  }
  func.func @transform_7(%arg0: i32) -> (i32, i32) {
    %c0_i32 = arith.constant 0 : i32
    %c0_i32_0 = arith.constant 0 : i32
    %c0_i32_1 = arith.constant 0 : i32
    return %c0_i32, %c0_i32_0 : i32, i32
  }
  func.func @transform_8(%arg0: i32) -> (i32, i32) {
    %c0_i32 = arith.constant 0 : i32
    %c0_i32_0 = arith.constant 0 : i32
    %c0_i32_1 = arith.constant 0 : i32
    return %c0_i32, %c0_i32_0 : i32, i32
  }
  func.func @transform_9(%arg0: i32) -> (i32, i32) {
    %c0_i32 = arith.constant 0 : i32
    %c0_i32_0 = arith.constant 0 : i32
    return %c0_i32, %arg0 : i32, i32
  }
  func.func @transform_10(%arg0: i32) -> (i32, i32) {
    %c0_i32 = arith.constant 0 : i32
    %c0_i32_0 = arith.constant 0 : i32
    return %c0_i32, %arg0 : i32, i32
  }
}

</mosaic_0001>

<bundles_post_ra>
// kernel: tpu_custom_call.1
= control target key start
LH: loop header
LB: loop body
LE: loop exit
PB: predicated region body
PF: predicated region fallthrough
CT: control target
= control target key end

     0   :  { %s1924_s0 = inlined_call_operand.hbm [shape: f32[16,1024], index: 0, kind: input, shape index: {}]   ;;  %s1925_s1 = inlined_call_operand.vmem [shape: f32[16,16], index: 1, kind: input, shape index: {}]   ;;  %s1926_s2 = inlined_call_operand.vmem [shape: f32[16,1], index: 2, kind: input, shape index: {}]   ;;  %s1927_s3 = inlined_call_operand.vmem [shape: f32[32,8], index: 3, kind: input, shape index: {}]   ;;  %s1928_s4 = inlined_call_operand.vmem [shape: f32[32,1], index: 4, kind: input, shape index: {}]   ;;  %s1929_s5 = inlined_call_operand.vmem [shape: f32[32,32], index: 5, kind: input, shape index: {}]   ;;  %s1930_s6 = inlined_call_operand.vmem [shape: f32[32,1], index: 6, kind: input, shape index: {}]   ;;  %s1931_s7 = inlined_call_operand.vmem [shape: f32[16,32], index: 7, kind: input, shape index: {}]   ;;  %s1932_s8 = inlined_call_operand.vmem [shape: f32[16,1], index: 8, kind: input, shape index: {}]   ;;  %s1933_s9 = inlined_call_operand.hbm [shape: f32[16,1024], index: 9, kind: output, shape index: {0}]   ;;  %s1934_s10 = inlined_call_operand.hbm [shape: f32[8,1024], index: 10, kind: output, shape index: {1}]  }
   0x1   :  { %1939 = sst [smem:[#allocation15_spill]] %s1924_s0 }
   0x2   :  { %16 = vsyncpa [#allocation3], 0 }
   0x3   :  { %18 = vsyncpa [#allocation3 + $0x1], 0 }
   0x4   :  { %19 = vsyncpa [#allocation4], 0 }
   0x5   :  { %21 = vsyncpa [#allocation4 + $0x1], 0 }
   0x6   :  { %22 = vsyncpa [#allocation7], 0 }
   0x7   :  { %24 = vsyncpa [#allocation7 + $0x1], 0  ;;  %s1597_s13 = smov 0   ;;  %s1599_s14 = smov 0  }
   0x8   :  { %s1601_s15 = smov 0   ;;  %s1603_s16 = smov 0  }
   0x9 LB: > { %1940 = sst [smem:[#allocation11_spill]] %s1529_s15  ;;  %s1618_s17 = sadd.s32 4294967295, %s1533_s16   ;;  %s1533_s16 = sphi %s1603_s16, %s1951_s16   ;;  %s1529_s15 = sphi %s1601_s15, %s1953_s15   ;;  %s1525_s14 = sphi %s1599_s14, %s1955_s14   ;;  %s1521_s13 = sphi %s1597_s13, %s1954_s13  }
   0xa   : > { %s1251_s18 = sadd.s32 4294967294, %s1533_s16   ;;  %s1622_s19 = sadd.s32 1, %s1533_s16  }
   0xb   : > { %1941 = sst [smem:[#allocation12_spill]] %s1622_s19  ;;  %s37_s20 = sadd.s32 1, %s1529_s15 }
   0xc   : > { %s34_s21 = ssub.s32 %s1533_s16, %s1622_s19  ;;  %p44_p0 = scmp.ne.s32.totalorder %s1529_s15, %s1525_s14 }
   0xd   : > { %p35_p1 = scmp.eq.s32.totalorder %s34_s21, 0  ;;  %p45_p2 = scmp.eq.s32.totalorder %s1533_s16, 0 }
   0xe   : > { %p50_p3 = scmp.ne.s32.totalorder %s1525_s14, %s1521_s13  ;;  %p51_p4 = scmp.eq.s32.totalorder %s1618_s17, 0 }
   0xf   : > { %s1634_s22 = scalar_select %p35_p1, %s1529_s15, %s37_s20  }
  0x10   : > { %p1636_p5 = por %p45_p2, %p44_p0  ;;  %p1640_p6 = por %p51_p4, %p50_p3 }
  0x11   : > { %1942 = sst [smem:[#allocation13_spill]] %s1634_s22  ;;  %p242_p7 = scmp.eq.s32.totalorder %s1618_s17, 1 }
  0x12   : > { %p248_p8 = scmp.eq.s32.totalorder %s1251_s18, 1  ;;  %p1253_p9 = scmp.ge.s32.totalorder %s1533_s16, 2 }
  0x13   : > { %p1337_p10 = scmp.lt.s32.totalorder %s1533_s16, 2  ;;  %p1647_p11 = por %p242_p7, %p44_p0 }
  0x14   : > { %p1651_p12 = por %p248_p8, %p50_p3  ;;  %s318_s27 = sand.u32 1, %s1529_s15  }
  0x15   : > { %s1317_s28 = sshll.u32 %s1533_s16, 5  ;;  %s1254_s29 = sshll.u32 %s318_s27, 6 }
  0x16   : > { %s1946_s26 = scalar_select %p1651_p12, 1, 0 }
  0x17   : > { %s1948_s0 = sld [smem:[#allocation15_spill]]  ;;  %s322_s21 = scalar_lea.vmem [#allocation2], %s1254_s29 }
  0x18   : > { %1947 = sst [smem:[#allocation14_spill]] %s1946_s26  ;;  %s330_s18 = sshll.u32 %s322_s21, 4  ;;  %s331_s18 = int_to_ptr.vmem [resolvable:$true] %s330_s18 }
  0x19   : > { %p1662_p13 = pnand %p1337_p10, %p1636_p5  ;;  %p1257_p0 = scmp.ge.s32.totalorder %s1533_s16, 1 }
  0x1a   : > { %s319_s19 = scalar_lea.sflag [#allocation3], %s318_s27 }
  0x1b   : > { %p1409_p2 = pneg %p1662_p13 }
  0x1d   : > { %s327_s12 = scalar_lea.hbm %s1948_s0, %s1317_s28  ;;  %s1412_s30 = scalar_lea.hbm %s1948_s0, 128 }
  0x1e   : > { %s328_s20 = sshll.u32 %s327_s12, 4  ;;  %s329_s20 = int_to_ptr.hbm [resolvable:$true] %s328_s20 }
  0x1f   : > { %s1405_s15 = sshra.s32 %s329_s20, 4  ;;  %s1406_s15 = int_to_ptr.hbm [resolvable:$true] %s1405_s15 }
  0x20   : > { %s1407_s26 = scalar_lea.hbm %s1406_s15, 64  ;;  %p1413_p5 = scmp.lt.s32.totalorder %s1406_s15, %s1948_s0 }
  0x21   : > { %p1408_p1 = scmp.ne.s32.totalorder %s1406_s15, %s1407_s26  ;;  %p1414_p7 = scmp.lt.s32.totalorder %s1412_s30, %s1407_s26 }
  0x23   : > { %p1410_p3 = pnand %p1409_p2, %p1408_p1  ;;  %p1415_p8 = por %p1414_p7, %p1413_p5 }
  0x25   : > { %p1411_p4 = pneg %p1410_p3 }
  0x27   : > { %p1416_p10 = pnand %p1415_p8, %p1411_p4 }
  0x29   : > { %1419 = shalt.err (!%p1416_p10)
}
  0x2a   : > { %s1535_s27 = smov 1024   ;;  %s1536_s12 = smov 512  }
  0x2b   : > { %s1537_s21 = smov 32   ;;  %p338_p1 = scmp.lt.s32.totalorder %s1533_s16, 3 }
  0x2c   : > { %1329 = dma.hbm_to_vmem [thread:$0]  (!%p1662_p13), %s329_s20, 1024, %s331_s18, %s319_s19, %s1535_s27, %s1536_s12, %s1537_s21  }
  0x2d   : > { %p339_p2 = pnand %p1257_p0, %p338_p1 }
  0x2e   : > { %s1681_s28 = sand.u32 (!%p339_p2), 1, %s1525_s14  }
  0x2f   : > { %342 = sbr.rel (%p339_p2) target bundleno = 717 (0x2cd), region = 56  ;;  %s1258_s15 = sshll.u32 (!%p339_p2), %s1681_s28, 6 }
  0x30   : > { %s345_s26 = scalar_lea.sflag (!%p339_p2), [#allocation3], %s1681_s28  ;;  %s348_s29 = scalar_lea.vmem (!%p339_p2), [#allocation2], %s1258_s15 }
  0x34   : > { %1508 = dma.done.wait (%p1640_p6), %s345_s26, 1024  }
  0x35   : > { %1510 = vsyncadd (%p1640_p6), %s345_s26, 4294966272  ;;  %v1538_v0 = vmov 0   ;;  %v404_v1 = vld [vmem:[%s1926_s2] sm:$0xff]  ;;  %v399_v3 = vld [vmem:[%s348_s29 + $0x28] sm:$0xff]  ;;  %vm416_vm0 = vcmask 130048   ;;  %vm543_vm1 = vcmask 64512  }
  0x36   : > { %1378 = vset.pattern.permute.xlu0 %v1538_v0  ;;  %1379 = vset.pattern.permute.xlu1 %v1538_v0  ;;  %v398_v2 = vld [vmem:[%s348_s29 + $0x20] sm:$0xff]  ;;  %v400_v4 = vld [vmem:[%s348_s29 + $0x30] sm:$0xff]  ;;  %v401_v5 = vld [vmem:[%s348_s29 + $0x38] sm:$0xff]  ;;  %s1734_s12 = scalar_lea.vmem [#allocation5], %s1258_s15  ;;  %vm716_vm2 = vcmask 261120   ;;  %s1260_s21 = sshll.u32 %s1681_s28, 5 }
  0x37   : > { %1380 = vset.pattern.permute.xlu2 %v1538_v0  ;;  %408 = vperm.xlu0 %1378, %v404_v1   ;;  %v394_v6 = vld [vmem:[%s348_s29] sm:$0xff]  ;;  %v395_v7 = vld [vmem:[%s348_s29 + $0x8] sm:$0xff]  ;;  %v396_v8 = vld [vmem:[%s348_s29 + $0x10] sm:$0xff]  ;;  %s1851_s26 = scalar_lea.vmem [#allocation6], %s1260_s21  ;;  %s1318_s15 = sshll.u32 %s1618_s17, 5 }
  0x38   : > { %437 = vmatpush.msra.mxu0 %v398_v2  ;;  %460 = vmatpush.msra.mxu1 %v399_v3  ;;  %v397_v9 = vld [vmem:[%s348_s29 + $0x18] sm:$0xff]  ;;  %v402_v10 = vld [vmem:[%s1925_s1] sm:$0xff]  ;;  %v694_v12 = vld [vmem:[%s1930_s6 + $0x10] sm:$0xff]  ;;  %s1127_s29 = sshll.u32 %s1734_s12, 4  ;;  %s1126_s24 = scalar_lea.hbm %s1933_s9, %s1318_s15  ;;  %s1868_s29 = int_to_ptr.vmem [resolvable:$true] %s1127_s29 }
  0x39   : > { %483 = vmatpush.msra.mxu2 %v400_v4  ;;  %506 = vmatpush.msra.mxu3 %v401_v5  ;;  %v522_v11 = vld [vmem:[%s1928_s4 + $0x18] sm:$0xff]  ;;  %v863_v13 = vld [vmem:[%s1932_s8] sm:$0xff]  ;;  %v521_v14 = vld [vmem:[%s1928_s4 + $0x10] sm:$0xff]  ;;  %s1129_s20 = sshll.u32 %s1126_s24, 4  ;;  %s1875_s23 = scalar_lea.hbm %s1934_s10, %s1318_s15  ;;  %s1130_s20 = int_to_ptr.hbm [resolvable:$true] %s1129_s20 }
  0x3a   : > { %438 = vmatpush.msra.mxu0 %v394_v6  ;;  %461 = vmatpush.msra.mxu1 %v395_v7  ;;  %v403_v15 = vld [vmem:[%s1925_s1 + $0x8] sm:$0xff]  ;;  %v515_v23 = vld [vmem:[%s1927_s3] sm:$0xff]  ;;  %v695_v31 = vld [vmem:[%s1930_s6 + $0x18] sm:$0xff]  ;;  %s1145_s11 = sshll.u32 %s1851_s26, 4  ;;  %s1147_s27 = sshll.u32 %s1875_s23, 4  ;;  %s1146_s11 = int_to_ptr.vmem [resolvable:$true] %s1145_s11  ;;  %s1148_s27 = int_to_ptr.hbm [resolvable:$true] %s1147_s27 }
  0x3b   : > { %484 = vmatpush.msra.mxu2 %v396_v8  ;;  %507 = vmatpush.msra.mxu3 %v397_v9  ;;  %v520_v16 = vld [vmem:[%s1928_s4 + $0x8] sm:$0xff]  ;;  %v519_v25 = vld [vmem:[%s1928_s4] sm:$0xff]  ;;  %v517_v32 = vld [vmem:[%s1927_s3 + $0x10] sm:$0xff]  ;;  %s1110_s21 = scalar_lea.sflag [#allocation4], %s1681_s28  ;;  %s1449_s19 = sshra.s32 %s1130_s20, 4  ;;  %s1450_s19 = int_to_ptr.hbm [resolvable:$true] %s1449_s19 }
  0x3c   : > { %1261 = vmatmul.msk.f32.vlgmr.msra.gmra.mxu0 %vm416_vm0, %v402_v10  ;;  %1263 = vmatmul.msk.f32.vlgmr.msra.gmra.mxu1 %vm416_vm0, %v402_v10  ;;  %v693_v17 = vld [vmem:[%s1930_s6 + $0x8] sm:$0xff]  ;;  %v692_v33 = vld [vmem:[%s1930_s6] sm:$0xff]  ;;  %v518_v34 = vld [vmem:[%s1927_s3 + $0x18] sm:$0xff]  ;;  %s1451_s22 = scalar_lea.hbm %s1450_s19, 64  ;;  %s1455_s24 = scalar_lea.hbm %s1933_s9, 128 }
  0x3d   : > { %1265 = vmatmul.msk.f32.vlgmr.msra.gmra.mxu2 %vm416_vm0, %v402_v10  ;;  %1267 = vmatmul.msk.f32.vlgmr.msra.gmra.mxu3 %vm416_vm0, %v402_v10  ;;  %v405_v18 = vld [vmem:[%s1926_s2 + $0x8] sm:$0xff]  ;;  %v688_v9 = vld [vmem:[%s1929_s5] sm:$0xff]  ;;  %p1452_p6 = scmp.ne.s32.totalorder %s1450_s19, %s1451_s22  ;;  %p1456_p3 = scmp.lt.s32.totalorder %s1450_s19, %s1933_s9 }
  0x3e   : > { %535 = vperm.xlu1 %1379, %v521_v14   ;;  %525 = vperm.xlu2 %1380, %v519_v25   ;;  %v516_v30 = vld [vmem:[%s1927_s3 + $0x8] sm:$0xff]  ;;  %p1457_p4 = scmp.lt.s32.totalorder %s1455_s24, %s1451_s22 }
  0x3f   : > { %540 = vperm.xlu0 %1378, %v522_v11   ;;  %v864_v35 = vld [vmem:[%s1932_s8 + $0x8] sm:$0xff]  ;;  %p1453_p13 = pnand %p1452_p6, %p1647_p11 }
  0x40   : > { %p1458_p5 = por %p1457_p4, %p1456_p3 }
  0x41   : > { %p1454_p0 = pneg %p1453_p13 }
  0x43   : > { %p1459_p7 = pnand %p1458_p5, %p1454_p0 }
  0x44   : > { %1262 = vmatmul.msk.f32.gmra.mxu0 %vm416_vm0, %v403_v15  ;;  %1264 = vmatmul.msk.f32.gmra.mxu1 %vm416_vm0, %v403_v15 }
  0x45   : > { %1266 = vmatmul.msk.f32.gmra.mxu2 %vm416_vm0, %v403_v15  ;;  %1268 = vmatmul.msk.f32.gmra.mxu3 %vm416_vm0, %v403_v15 }
  0x46   : > { %530 = vperm.xlu1 %1379, %v520_v16   ;;  %713 = vperm.xlu2 %1380, %v695_v31   ;;  %v691_v31 = vld [vmem:[%s1929_s5 + $0x18] sm:$0xff] }
  0x47   : > { %708 = vperm.xlu0 %1378, %v694_v12  }
  0x4e   : > { %703 = vperm.xlu1 %1379, %v693_v17   ;;  %698 = vperm.xlu2 %1380, %v692_v33  }
  0x4f   : > { %867 = vperm.xlu0 %1378, %v863_v13  }
  0x56   : > { %413 = vperm.xlu1 %1379, %v405_v18   ;;  %872 = vperm.xlu2 %1380, %v864_v35  }
  0x98   : > { %v526_v63 = vpop.permute.xlu2 %525 }
  0xa9   : > { %v409_v19 = vpop.permute.xlu0 %408 }
  0xb0   : > { %v536_v45 = vpop.permute.xlu1 %535 }
  0xb1   : > { %v541_v51 = vpop.permute.xlu0 %540 }
  0xb8   : > { %v531_v53 = vpop.permute.xlu1 %530 }
  0xb9   : > { %v440_v20 = vpop.f32.mrf.mxu0  ;;  %v463_v22 = vpop.f32.mrf.mxu1 }
  0xba   : > { %v441_v21 = vadd.f32 %v440_v20, %v409_v19  ;;  %v464_v24 = vadd.f32 %v463_v22, %v409_v19 }
  0xbc   : > { %1061 = vst [vmem:[%s1734_s12] sm:$0xff] %v441_v21  ;;  %571 = vmatpush.msrb.mxu0 %v441_v21  ;;  %600 = vmatpush.msrb.mxu1 %v464_v24  ;;  %v689_v21 = vld [vmem:[%s1929_s5 + $0x8] sm:$0xff] }
  0xbd   : > { %1062 = vst [vmem:[%s1734_s12 + $0x8] sm:$0xff] %v464_v24  ;;  %1269 = vmatmul.msk.f32.vlgmr.msrb.gmra.mxu0 %vm543_vm1, %v515_v23  ;;  %1273 = vmatmul.msk.f32.vlgmr.msrb.gmra.mxu1 %vm543_vm1, %v515_v23 }
  0xc0   : > { %v486_v26 = vpop.f32.mrf.mxu2  ;;  %v509_v28 = vpop.f32.mrf.mxu3 }
  0xc1   : > { %v487_v27 = vadd.f32 %v486_v26, %v409_v19  ;;  %v510_v29 = vadd.f32 %v509_v28, %v409_v19  ;;  %v1777_v36 = vpop.f32.mrf.mxu0  ;;  %v1779_v37 = vpop.f32.mrf.mxu1 }
  0xc3   : > { %1063 = vst [vmem:[%s1734_s12 + $0x10] sm:$0xff] %v487_v27  ;;  %629 = vmatpush.msrb.mxu2 %v487_v27  ;;  %658 = vmatpush.msrb.mxu3 %v510_v29 }
  0xc4   : > { %1064 = vst [vmem:[%s1734_s12 + $0x18] sm:$0xff] %v510_v29  ;;  %1277 = vmatmul.msk.f32.vlgmr.msrb.gmra.mxu2 %vm543_vm1, %v515_v23  ;;  %1281 = vmatmul.msk.f32.vlgmr.msrb.gmra.mxu3 %vm543_vm1, %v515_v23 }
  0xc5   : > { %1270 = vmatmul.msk.f32.gmra.mxu0 %vm543_vm1, %v516_v30  ;;  %1274 = vmatmul.msk.f32.gmra.mxu1 %vm543_vm1, %v516_v30 }
  0xc8   : > { %v1781_v40 = vpop.f32.mrf.mxu2  ;;  %v1783_v41 = vpop.f32.mrf.mxu3 }
  0xcc   : > { %1278 = vmatmul.msk.f32.gmra.mxu2 %vm543_vm1, %v516_v30  ;;  %1282 = vmatmul.msk.f32.gmra.mxu3 %vm543_vm1, %v516_v30  ;;  %v690_v30 = vld [vmem:[%s1929_s5 + $0x10] sm:$0xff] }
  0xcd   : > { %1271 = vmatmul.msk.f32.gmra.mxu0 %vm543_vm1, %v517_v32  ;;  %1275 = vmatmul.msk.f32.gmra.mxu1 %vm543_vm1, %v517_v32 }
  0xd4   : > { %1279 = vmatmul.msk.f32.gmra.mxu2 %vm543_vm1, %v517_v32  ;;  %1283 = vmatmul.msk.f32.gmra.mxu3 %vm543_vm1, %v517_v32 }
  0xd5   : > { %1272 = vmatmul.msk.f32.gmra.mxu0 %vm543_vm1, %v518_v34  ;;  %1276 = vmatmul.msk.f32.gmra.mxu1 %vm543_vm1, %v518_v34 }
  0xdc   : > { %1280 = vmatmul.msk.f32.gmra.mxu2 %vm543_vm1, %v518_v34  ;;  %1284 = vmatmul.msk.f32.gmra.mxu3 %vm543_vm1, %v518_v34 }
 0x13a   : > { %v573_v38 = vpop.f32.mrf.mxu0  ;;  %v602_v39 = vpop.f32.mrf.mxu1 }
 0x13b   : > { %v574_v4 = vadd.f32 %v573_v38, %v526_v63  ;;  %v603_v7 = vadd.f32 %v602_v39, %v526_v63 }
 0x13d   : > { %v672_v8 = vmax.f32 %v574_v4, 0.0  ;;  %v673_v10 = vmax.f32 %v603_v7, 0.0  ;;  %v862_v7 = vld [vmem:[%s1931_s7 + $0x8] sm:$0xff] }
 0x142   : > { %v576_v42 = vpop.f32.mrf.mxu0  ;;  %v605_v43 = vpop.f32.mrf.mxu1 }
 0x143   : > { %v577_v56 = vadd.f32 %v576_v42, %v531_v53  ;;  %v606_v59 = vadd.f32 %v605_v43, %v531_v53  ;;  %v714_v42 = vpop.permute.xlu2 %713 }
 0x145   : > { %v676_v2 = vmax.f32 %v577_v56, 0.0  ;;  %v677_v5 = vmax.f32 %v606_v59, 0.0 }
 0x147   : > { %v631_v44 = vpop.f32.mrf.mxu2  ;;  %v660_v46 = vpop.f32.mrf.mxu3 }
 0x148   : > { %v632_v22 = vadd.f32 %v631_v44, %v526_v63  ;;  %v661_v24 = vadd.f32 %v660_v46, %v526_v63 }
 0x14a   : > { %v579_v47 = vpop.f32.mrf.mxu0  ;;  %v608_v48 = vpop.f32.mrf.mxu1  ;;  %v674_v28 = vmax.f32 %v632_v22, 0.0  ;;  %v675_v29 = vmax.f32 %v661_v24, 0.0 }
 0x14b   : > { %v580_v52 = vadd.f32 %v579_v47, %v536_v45  ;;  %v609_v54 = vadd.f32 %v608_v48, %v536_v45  ;;  %v699_v56 = vpop.permute.xlu2 %698 }
 0x14d   : > { %v680_v61 = vmax.f32 %v580_v52, 0.0  ;;  %v681_v0 = vmax.f32 %v609_v54, 0.0 }
 0x14f   : > { %v634_v49 = vpop.f32.mrf.mxu2  ;;  %v663_v50 = vpop.f32.mrf.mxu3 }
 0x150   : > { %v635_v17 = vadd.f32 %v634_v49, %v531_v53  ;;  %v664_v19 = vadd.f32 %v663_v50, %v531_v53  ;;  %v704_v50 = vpop.permute.xlu1 %703 }
 0x152   : > { %v582_v55 = vpop.f32.mrf.mxu0  ;;  %v611_v58 = vpop.f32.mrf.mxu1  ;;  %v678_v26 = vmax.f32 %v635_v17, 0.0  ;;  %v679_v27 = vmax.f32 %v664_v19, 0.0 }
 0x153   : > { %v583_v57 = vadd.f32 %v582_v55, %v541_v51  ;;  %v612_v60 = vadd.f32 %v611_v58, %v541_v51 }
 0x155   : > { %v684_v62 = vmax.f32 %v583_v57, 0.0  ;;  %v685_v1 = vmax.f32 %v612_v60, 0.0 }
 0x157   : > { %v637_v3 = vpop.f32.mrf.mxu2  ;;  %741 = vmatpush.msra.mxu0 %v684_v62  ;;  %v666_v6 = vpop.f32.mrf.mxu3  ;;  %770 = vmatpush.msra.mxu1 %v685_v1 }
 0x158   : > { %v638_v12 = vadd.f32 %v637_v3, %v536_v45  ;;  %v667_v15 = vadd.f32 %v666_v6, %v536_v45  ;;  %v709_v45 = vpop.permute.xlu0 %708  ;;  %v861_v3 = vld [vmem:[%s1931_s7] sm:$0xff] }
 0x159   : > { %742 = vmatpush.msra.mxu0 %v680_v61  ;;  %771 = vmatpush.msra.mxu1 %v681_v0 }
 0x15a   : > { %v682_v23 = vmax.f32 %v638_v12, 0.0  ;;  %v683_v25 = vmax.f32 %v667_v15, 0.0 }
 0x15b   : > { %743 = vmatpush.msra.mxu0 %v676_v2  ;;  %772 = vmatpush.msra.mxu1 %v677_v5 }
 0x15d   : > { %744 = vmatpush.msra.mxu0 %v672_v8  ;;  %773 = vmatpush.msra.mxu1 %v673_v10 }
 0x15e   : > { %1285 = vmatmul.msk.f32.vlgmr.msra.gmra.mxu0 %vm716_vm2, %v688_v9  ;;  %1289 = vmatmul.msk.f32.vlgmr.msra.gmra.mxu1 %vm716_vm2, %v688_v9 }
 0x15f   : > { %v640_v11 = vpop.f32.mrf.mxu2  ;;  %v669_v14 = vpop.f32.mrf.mxu3 }
 0x160   : > { %v641_v13 = vadd.f32 %v640_v11, %v541_v51  ;;  %v670_v16 = vadd.f32 %v669_v14, %v541_v51 }
 0x162   : > { %v686_v18 = vmax.f32 %v641_v13, 0.0  ;;  %v687_v20 = vmax.f32 %v670_v16, 0.0 }
 0x164   : > { %799 = vmatpush.msra.mxu2 %v686_v18  ;;  %828 = vmatpush.msra.mxu3 %v687_v20 }
 0x166   : > { %800 = vmatpush.msra.mxu2 %v682_v23  ;;  %1286 = vmatmul.msk.f32.gmra.mxu0 %vm716_vm2, %v689_v21 }
 0x167   : > { %829 = vmatpush.msra.mxu3 %v683_v25  ;;  %1290 = vmatmul.msk.f32.gmra.mxu1 %vm716_vm2, %v689_v21 }
 0x168   : > { %801 = vmatpush.msra.mxu2 %v678_v26  ;;  %v868_v26 = vpop.permute.xlu0 %867 }
 0x169   : > { %830 = vmatpush.msra.mxu3 %v679_v27 }
 0x16a   : > { %802 = vmatpush.msra.mxu2 %v674_v28 }
 0x16b   : > { %831 = vmatpush.msra.mxu3 %v675_v29  ;;  %1293 = vmatmul.msk.f32.vlgmr.msra.gmra.mxu2 %vm716_vm2, %v688_v9 }
 0x16c   : > { %1297 = vmatmul.msk.f32.vlgmr.msra.gmra.mxu3 %vm716_vm2, %v688_v9 }
 0x16e   : > { %1287 = vmatmul.msk.f32.gmra.mxu0 %vm716_vm2, %v690_v30 }
 0x16f   : > { %1291 = vmatmul.msk.f32.gmra.mxu1 %vm716_vm2, %v690_v30 }
 0x173   : > { %1294 = vmatmul.msk.f32.gmra.mxu2 %vm716_vm2, %v689_v21 }
 0x174   : > { %1298 = vmatmul.msk.f32.gmra.mxu3 %vm716_vm2, %v689_v21 }
 0x176   : > { %1288 = vmatmul.msk.f32.gmra.mxu0 %vm716_vm2, %v691_v31 }
 0x177   : > { %1292 = vmatmul.msk.f32.gmra.mxu1 %vm716_vm2, %v691_v31 }
 0x17b   : > { %1295 = vmatmul.msk.f32.gmra.mxu2 %vm716_vm2, %v690_v30 }
 0x17c   : > { %1299 = vmatmul.msk.f32.gmra.mxu3 %vm716_vm2, %v690_v30 }
 0x183   : > { %1296 = vmatmul.msk.f32.gmra.mxu2 %vm716_vm2, %v691_v31 }
 0x184   : > { %1300 = vmatmul.msk.f32.gmra.mxu3 %vm716_vm2, %v691_v31 }
 0x1db   : > { %v746_v32 = vpop.f32.mrf.mxu0  ;;  %v775_v33 = vpop.f32.mrf.mxu1 }
 0x1dc   : > { %v747_v60 = vadd.f32 %v746_v32, %v699_v56  ;;  %v776_v62 = vadd.f32 %v775_v33, %v699_v56 }
 0x1de   : > { %v845_v2 = vmax.f32 %v747_v60, 0.0  ;;  %v846_v4 = vmax.f32 %v776_v62, 0.0 }
 0x1e3   : > { %v749_v34 = vpop.f32.mrf.mxu0 }
 0x1e4   : > { %v778_v35 = vpop.f32.mrf.mxu1  ;;  %v750_v53 = vadd.f32 %v749_v34, %v704_v50 }
 0x1e5   : > { %v779_v57 = vadd.f32 %v778_v35, %v704_v50 }
 0x1e6   : > { %v849_v0 = vmax.f32 %v750_v53, 0.0 }
 0x1e7   : > { %v850_v1 = vmax.f32 %v779_v57, 0.0 }
 0x1eb   : > { %v752_v38 = vpop.f32.mrf.mxu0 }
 0x1ec   : > { %v781_v39 = vpop.f32.mrf.mxu1  ;;  %v753_v47 = vadd.f32 %v752_v38, %v709_v45 }
 0x1ed   : > { %v782_v51 = vadd.f32 %v781_v39, %v709_v45 }
 0x1ee   : > { %v804_v43 = vpop.f32.mrf.mxu2  ;;  %v853_v61 = vmax.f32 %v753_v47, 0.0  ;;  %v1829_v47 = vpop.permute.xlu2 %872 }
 0x1ef   : > { %v833_v44 = vpop.f32.mrf.mxu3  ;;  %v854_v63 = vmax.f32 %v782_v51, 0.0  ;;  %v805_v18 = vadd.f32 %v804_v43, %v699_v56 }
 0x1f0   : > { %v834_v20 = vadd.f32 %v833_v44, %v699_v56 }
 0x1f1   : > { %v847_v24 = vmax.f32 %v805_v18, 0.0 }
 0x1f2   : > { %v848_v25 = vmax.f32 %v834_v20, 0.0 }
 0x1f3   : > { %v755_v46 = vpop.f32.mrf.mxu0 }
 0x1f4   : > { %v756_v48 = vadd.f32 %v755_v46, %v714_v42  ;;  %v784_v49 = vpop.f32.mrf.mxu1 }
 0x1f5   : > { %v785_v52 = vadd.f32 %v784_v49, %v714_v42 }
 0x1f6   : > { %v857_v54 = vmax.f32 %v756_v48, 0.0  ;;  %v807_v55 = vpop.f32.mrf.mxu2 }
 0x1f7   : > { %v858_v58 = vmax.f32 %v785_v52, 0.0  ;;  %v836_v59 = vpop.f32.mrf.mxu3  ;;  %v808_v14 = vadd.f32 %v807_v55, %v704_v50 }
 0x1f8   : > { %893 = vmatpush.msrb.mxu0 %v857_v54  ;;  %v837_v16 = vadd.f32 %v836_v59, %v704_v50  ;;  %v1835_v50 = vpop.permute.xlu1 %413 }
 0x1f9   : > { %916 = vmatpush.msrb.mxu1 %v858_v58  ;;  %v851_v22 = vmax.f32 %v808_v14, 0.0  ;;  %v444_v51 = vadd.f32 %v1777_v36, %v1835_v50  ;;  %v467_v52 = vadd.f32 %v1779_v37, %v1835_v50 }
 0x1fa   : > { %894 = vmatpush.msrb.mxu0 %v853_v61  ;;  %v852_v23 = vmax.f32 %v837_v16, 0.0 }
 0x1fb   : > { %917 = vmatpush.msrb.mxu1 %v854_v63 }
 0x1fc   : > { %895 = vmatpush.msrb.mxu0 %v849_v0 }
 0x1fd   : > { %918 = vmatpush.msrb.mxu1 %v850_v1 }
 0x1fe   : > { %v810_v5 = vpop.f32.mrf.mxu2  ;;  %896 = vmatpush.msrb.mxu0 %v845_v2 }
 0x1ff   : > { %v839_v6 = vpop.f32.mrf.mxu3  ;;  %919 = vmatpush.msrb.mxu1 %v846_v4  ;;  %1301 = vmatmul.msk.f32.vlgmr.msrb.gmra.mxu0 %vm716_vm2, %v861_v3  ;;  %v811_v9 = vadd.f32 %v810_v5, %v709_v45 }
 0x200   : > { %1303 = vmatmul.msk.f32.vlgmr.msrb.gmra.mxu1 %vm716_vm2, %v861_v3  ;;  %v840_v12 = vadd.f32 %v839_v6, %v709_v45 }
 0x201   : > { %v855_v19 = vmax.f32 %v811_v9, 0.0 }
 0x202   : > { %v856_v21 = vmax.f32 %v840_v12, 0.0 }
 0x206   : > { %v813_v8 = vpop.f32.mrf.mxu2 }
 0x207   : > { %v814_v10 = vadd.f32 %v813_v8, %v714_v42  ;;  %v842_v11 = vpop.f32.mrf.mxu3  ;;  %1302 = vmatmul.msk.f32.gmra.mxu0 %vm716_vm2, %v862_v7 }
 0x208   : > { %v843_v13 = vadd.f32 %v842_v11, %v714_v42  ;;  %1304 = vmatmul.msk.f32.gmra.mxu1 %vm716_vm2, %v862_v7 }
 0x209   : > { %v859_v15 = vmax.f32 %v814_v10, 0.0 }
 0x20a   : > { %v860_v17 = vmax.f32 %v843_v13, 0.0 }
 0x20b   : > { %939 = vmatpush.msrb.mxu2 %v859_v15 }
 0x20c   : > { %962 = vmatpush.msrb.mxu3 %v860_v17 }
 0x20d   : > { %940 = vmatpush.msrb.mxu2 %v855_v19 }
 0x20e   : > { %963 = vmatpush.msrb.mxu3 %v856_v21 }
 0x20f   : > { %941 = vmatpush.msrb.mxu2 %v851_v22 }
 0x210   : > { %964 = vmatpush.msrb.mxu3 %v852_v23 }
 0x211   : > { %942 = vmatpush.msrb.mxu2 %v847_v24 }
 0x212   : > { %965 = vmatpush.msrb.mxu3 %v848_v25  ;;  %1305 = vmatmul.msk.f32.vlgmr.msrb.gmra.mxu2 %vm716_vm2, %v861_v3 }
 0x213   : > { %1307 = vmatmul.msk.f32.vlgmr.msrb.gmra.mxu3 %vm716_vm2, %v861_v3 }
 0x21a   : > { %1306 = vmatmul.msk.f32.gmra.mxu2 %vm716_vm2, %v862_v7 }
 0x21b   : > { %1308 = vmatmul.msk.f32.gmra.mxu3 %vm716_vm2, %v862_v7 }
 0x27c   : > { %v898_v27 = vpop.f32.mrf.mxu0 }
 0x27d   : > { %v899_v28 = vadd.f32 %v898_v27, %v868_v26  ;;  %v921_v29 = vpop.f32.mrf.mxu1 }
 0x27e   : > { %v922_v30 = vadd.f32 %v921_v29, %v868_v26 }
 0x27f   : > { %v973_v31 = vadd.f32 2.0, %v899_v28 }
 0x280   : > { %v974_v32 = vadd.f32 2.0, %v922_v30 }
 0x281   : > { %v977_v33 = vsub.f32 0.0, %v973_v31 }
 0x282   : > { %v978_v34 = vsub.f32 0.0, %v974_v32 }
 0x283   : > { %v981_v35 = vmul.f32 1.442695, %v977_v33 }
 0x284   : > { %v983_v38 = vmul.f32 1.442695, %v978_v34  ;;  %v901_v45 = vpop.f32.mrf.mxu0 }
 0x285   : > { %1381 = vpow2.f32 %v981_v35  ;;  %v924_v46 = vpop.f32.mrf.mxu1  ;;  %v902_v48 = vadd.f32 %v901_v45, %v1829_v47 }
 0x286   : > { %1383 = vpow2.f32 %v983_v38  ;;  %v925_v49 = vadd.f32 %v924_v46, %v1829_v47 }
 0x287   : > { %v1053_v56 = vadd.f32 %v902_v48, %v444_v51 }
 0x288   : > { %v1054_v57 = vadd.f32 %v925_v49, %v467_v52 }
 0x28b   : > { %v1382_v39 = vpop.eup %1381 }
 0x28c   : > { %v1384_v42 = vpop.eup %1383  ;;  %v989_v43 = vadd.f32 1.0, %v1382_v39 }
 0x28d   : > { %v1827_v44 = vadd.f32 1.0, %v1384_v42 }
 0x28e   : > { %1385 = vrcp.f32 %v989_v43  ;;  %vm998_vm3 = vweird.f32 %v989_v43  ;;  %v1002_v61 = vand.u32 2147483647, %v989_v43  ;;  %v1004_v62 = vand.u32 2147483648, %v989_v43 }
 0x28f   : > { %1387 = vlog2.f32 %v989_v43  ;;  %vm1013_vm4 = vweird.f32 %v1827_v44  ;;  %v1017_v5 = vand.u32 2147483647, %v1827_v44  ;;  %v1019_v11 = vand.u32 2147483648, %v1827_v44 }
 0x290   : > { %1389 = vrcp.f32 %v1827_v44  ;;  %v1005_v17 = vor.u32 1.1754944e-38, %v1004_v62  ;;  %vm1003_vm8 = vcmp.eq.f32.partialorder %v1002_v61, 8.507059e+37 }
 0x291   : > { %1391 = vlog2.f32 %v1827_v44  ;;  %v1020_v25 = vor.u32 1.1754944e-38, %v1019_v11  ;;  %vm1018_vm10 = vcmp.eq.f32.partialorder %v1017_v5, 8.507059e+37 }
 0x294   : > { %v1386_v53 = vpop.eup %1385 }
 0x295   : > { %v1388_v54 = vpop.eup %1387  ;;  %v994_v55 = vmul.f32 %v1386_v53, %v989_v43  ;;  %v944_v58 = vpop.f32.mrf.mxu2  ;;  %vm999_vm5 = vweird.f32 %v1386_v53 }
 0x296   : > { %v1390_v59 = vpop.eup %1389  ;;  %v1070_v60 = vmul.f32 0.6931472, %v1388_v54  ;;  %v945_v63 = vadd.f32 %v944_v58, %v868_v26  ;;  %v967_v0 = vpop.f32.mrf.mxu3  ;;  %vm1000_vm7 = vmor %vm998_vm3, %vm999_vm5  ;;  %v513_v58 = vadd.f32 %v1783_v41, %v1835_v50 }
 0x297   : > { %v1392_v1 = vpop.eup %1391  ;;  %v995_v2 = vsub.f32 1.0, %v994_v55  ;;  %v1009_v36 = vmul.f32 %v1390_v59, %v1827_v44  ;;  %v968_v37 = vadd.f32 %v967_v0, %v868_v26  ;;  %vm1014_vm6 = vweird.f32 %v1390_v59 }
 0x298   : > { %v1077_v3 = vrot.slane %v1070_v60, 4  ;;  %v1072_v4 = vmul.f32 0.6931472, %v1392_v1  ;;  %v975_v6 = vadd.f32 2.0, %v945_v63  ;;  %vm1015_vm9 = vmor %vm1013_vm4, %vm1014_vm6  ;;  %v490_v55 = vadd.f32 %v1781_v40, %v1835_v50 }
 0x299   : > { %v996_v7 = vmul.f32 %v1386_v53, %v995_v2  ;;  %v1010_v8 = vsub.f32 1.0, %v1009_v36  ;;  %v976_v9 = vadd.f32 2.0, %v968_v37 }
 0x29a   : > { %v1083_v10 = vrot.slane %v1072_v4, 4  ;;  %v979_v12 = vsub.f32 0.0, %v975_v6  ;;  %v1078_v13 = vadd.f32 %v1077_v3, %v1070_v60 }
 0x29b   : > { %v997_v14 = vadd.f32 %v1386_v53, %v996_v7  ;;  %v1011_v15 = vmul.f32 %v1390_v59, %v1010_v8  ;;  %v980_v16 = vsub.f32 0.0, %v976_v9 }
 0x29c   : > { %v985_v18 = vmul.f32 1.442695, %v979_v12  ;;  %v1079_v19 = vrot.slane %v1078_v13, 2  ;;  %v1084_v20 = vadd.f32 %v1083_v10, %v1072_v4 }
 0x29d   : > { %v1001_v21 = vsel %vm1000_vm7, %v1386_v53, %v997_v14  ;;  %v1012_v22 = vadd.f32 %v1390_v59, %v1011_v15  ;;  %v987_v23 = vmul.f32 1.442695, %v980_v16  ;;  %v947_v49 = vpop.f32.mrf.mxu2 }
 0x29e   : > { %v1006_v24 = vsel %vm1003_vm8, %v1005_v17, %v1001_v21  ;;  %1393 = vpow2.f32 %v985_v18  ;;  %v1080_v26 = vadd.f32 %v1079_v19, %v1078_v13  ;;  %v1085_v31 = vrot.slane %v1084_v20, 2  ;;  %v970_v53 = vpop.f32.mrf.mxu3 }
 0x29f   : > { %v1057_v27 = vmul.f32 %v1053_v56, %v1006_v24  ;;  %v1016_v28 = vsel %vm1015_vm9, %v1390_v59, %v1012_v22  ;;  %1395 = vpow2.f32 %v987_v23  ;;  %v948_v59 = vadd.f32 %v947_v49, %v1829_v47 }
 0x2a0   : > { %v1021_v29 = vsel %vm1018_vm10, %v1020_v25, %v1016_v28  ;;  %v1081_v30 = vrot.slane %v1080_v26, 1  ;;  %v1086_v34 = vadd.f32 %v1085_v31, %v1084_v20  ;;  %v971_v1 = vadd.f32 %v970_v53, %v1829_v47 }
 0x2a1   : > { %1065 = vst [vmem:[%s1734_s12 + $0x20] sm:$0xff] %v1057_v27  ;;  %v1058_v32 = vmul.f32 %v1054_v57, %v1021_v29  ;;  %v1055_v6 = vadd.f32 %v948_v59, %v490_v55 }
 0x2a2   : > { %v1082_v33 = vadd.f32 %v1081_v30, %v1080_v26  ;;  %v1087_v38 = vrot.slane %v1086_v34, 1  ;;  %v1056_v17 = vadd.f32 %v971_v1, %v513_v58 }
 0x2a3   : > { %1066 = vst [vmem:[%s1734_s12 + $0x28] sm:$0xff] %v1058_v32 }
 0x2a4   : > { %v1394_v35 = vpop.eup %1393  ;;  %v1101_v39 = vsub.f32 0.0, %v1082_v33  ;;  %v1088_v45 = vadd.f32 %v1087_v38, %v1086_v34 }
 0x2a5   : > { %v1396_v42 = vpop.eup %1395  ;;  %v991_v43 = vadd.f32 1.0, %v1394_v35 }
 0x2a6   : > { %v992_v44 = vadd.f32 1.0, %v1396_v42  ;;  %1105 = vst [vmem:[%s1851_s26] sm:$0xff] %v1101_v39  ;;  %v1102_v46 = vsub.f32 0.0, %v1088_v45 }
 0x2a7   : > { %1397 = vrcp.f32 %v991_v43  ;;  %v1034_v0 = vand.u32 2147483648, %v991_v43  ;;  %v1032_v40 = vand.u32 2147483647, %v991_v43  ;;  %vm1028_vm12 = vweird.f32 %v991_v43 }
 0x2a8   : > { %1399 = vlog2.f32 %v991_v43  ;;  %1106 = vst [vmem:[%s1851_s26 + $0x8] sm:$0xff] %v1102_v46  ;;  %v1049_v3 = vand.u32 2147483648, %v992_v44  ;;  %v1047_v5 = vand.u32 2147483647, %v992_v44  ;;  %vm1043_vm0 = vweird.f32 %v992_v44 }
 0x2a9   : > { %1401 = vrcp.f32 %v992_v44  ;;  %v1035_v47 = vor.u32 1.1754944e-38, %v1034_v0  ;;  %vm1033_vm15 = vcmp.eq.f32.partialorder %v1032_v40, 8.507059e+37 }
 0x2aa   : > { %1403 = vlog2.f32 %v992_v44  ;;  %v1050_v12 = vor.u32 1.1754944e-38, %v1049_v3  ;;  %vm1048_vm2 = vcmp.eq.f32.partialorder %v1047_v5, 8.507059e+37 }
 0x2ad   : > { %v1398_v48 = vpop.eup %1397 }
 0x2ae   : > { %v1400_v51 = vpop.eup %1399  ;;  %v1024_v52 = vmul.f32 %v1398_v48, %v991_v43  ;;  %vm1029_vm11 = vweird.f32 %v1398_v48 }
 0x2af   : > { %v1402_v54 = vpop.eup %1401  ;;  %v1074_v56 = vmul.f32 0.6931472, %v1400_v51  ;;  %vm1030_vm14 = vmor %vm1028_vm12, %vm1029_vm11 }
 0x2b0   : > { %v1404_v57 = vpop.eup %1403  ;;  %v1025_v60 = vsub.f32 1.0, %v1024_v52  ;;  %v1039_v61 = vmul.f32 %v1402_v54, %v992_v44  ;;  %vm1044_vm13 = vweird.f32 %v1402_v54 }
 0x2b1   : > { %v1089_v62 = vrot.slane %v1074_v56, 4  ;;  %v1076_v63 = vmul.f32 0.6931472, %v1404_v57  ;;  %vm1045_vm1 = vmor %vm1043_vm0, %vm1044_vm13 }
 0x2b2   : > { %v1026_v2 = vmul.f32 %v1398_v48, %v1025_v60  ;;  %v1040_v36 = vsub.f32 1.0, %v1039_v61 }
 0x2b3   : > { %v1095_v37 = vrot.slane %v1076_v63, 4  ;;  %v1090_v41 = vadd.f32 %v1089_v62, %v1074_v56 }
 0x2b4   : > { %v1027_v50 = vadd.f32 %v1398_v48, %v1026_v2  ;;  %v1041_v4 = vmul.f32 %v1402_v54, %v1040_v36 }
 0x2b5   : > { %v1091_v7 = vrot.slane %v1090_v41, 2  ;;  %v1096_v8 = vadd.f32 %v1095_v37, %v1076_v63 }
 0x2b6   : > { %v1031_v9 = vsel %vm1030_vm14, %v1398_v48, %v1027_v50  ;;  %v1042_v10 = vadd.f32 %v1402_v54, %v1041_v4 }
 0x2b7   : > { %v1036_v11 = vsel %vm1033_vm15, %v1035_v47, %v1031_v9  ;;  %v1092_v13 = vadd.f32 %v1091_v7, %v1090_v41  ;;  %v1097_v14 = vrot.slane %v1096_v8, 2 }
 0x2b8   : > { %v1059_v15 = vmul.f32 %v1055_v6, %v1036_v11  ;;  %v1046_v16 = vsel %vm1045_vm1, %v1402_v54, %v1042_v10 }
 0x2b9   : > { %v1051_v18 = vsel %vm1048_vm2, %v1050_v12, %v1046_v16  ;;  %v1093_v19 = vrot.slane %v1092_v13, 1  ;;  %v1098_v20 = vadd.f32 %v1097_v14, %v1096_v8 }
 0x2ba   : > { %1067 = vst [vmem:[%s1734_s12 + $0x30] sm:$0xff] %v1059_v15  ;;  %v1060_v21 = vmul.f32 %v1056_v17, %v1051_v18 }
 0x2bb   : > { %v1094_v22 = vadd.f32 %v1093_v19, %v1092_v13  ;;  %v1099_v23 = vrot.slane %v1098_v20, 1 }
 0x2bc   : > { %1068 = vst [vmem:[%s1734_s12 + $0x38] sm:$0xff] %v1060_v21 }
 0x2bd   : > { %1462 = shalt.err (!%p1459_p7)
}
 0x2be   : > { %s1539_s12 = smov 512   ;;  %s1540_s23 = smov 1024   ;;  %v1100_v24 = vadd.f32 %v1099_v23, %v1098_v20  ;;  %v1103_v25 = vsub.f32 0.0, %v1094_v22 }
 0x2bf   : > { %s1541_s0 = smov 32   ;;  %s1115_s19 = scalar_lea.sflag [#allocation7], %s1681_s28 }
 0x2c0   : > { %1322 = dma.vmem_to_hbm [thread:$0]  (%p1647_p11), %s1868_s29, 1024, %s1130_s20, %s1110_s21, %s1539_s12, %s1540_s23, %s1541_s0   ;;  %v1104_v26 = vsub.f32 0.0, %v1100_v24 }
 0x2c1   : > { %1107 = vst [vmem:[%s1851_s26 + $0x10] sm:$0xff] %v1103_v25  ;;  %s1477_s22 = sshra.s32 %s1148_s27, 4  ;;  %s1483_s18 = scalar_lea.hbm %s1934_s10, 64  ;;  %s1478_s22 = int_to_ptr.hbm [resolvable:$true] %s1477_s22 }
 0x2c2   : > { %1108 = vst [vmem:[%s1851_s26 + $0x18] sm:$0xff] %v1104_v26  ;;  %s1479_s17 = scalar_lea.hbm %s1478_s22, 32  ;;  %p1484_p2 = scmp.lt.s32.totalorder %s1478_s22, %s1934_s10 }
 0x2c3   : > { %p1480_p8 = scmp.ne.s32.totalorder %s1478_s22, %s1479_s17  ;;  %p1485_p6 = scmp.lt.s32.totalorder %s1483_s18, %s1479_s17 }
 0x2c5   : > { %p1481_p10 = pnand %p1480_p8, %p1647_p11  ;;  %p1486_p13 = por %p1485_p6, %p1484_p2 }
 0x2c7   : > { %p1482_p1 = pneg %p1481_p10 }
 0x2c9   : > { %p1487_p0 = pnand %p1486_p13, %p1482_p1 }
 0x2cb   : > { %1490 = shalt.err (!%p1487_p0)
}
 0x2cc   : > { %1323 = dma.vmem_to_hbm [thread:$0]  (%p1647_p11), %s1146_s11, 512, %s1148_s27, %s1115_s19  }
 0x2cd PF: > { %s1159_s26 = sand.u32 1, %s1521_s13   ;;  %p1331_p3 = pnand %p1253_p9, %p1651_p12 }
 0x2ce   : > { %s1160_s20 = scalar_lea.sflag [#allocation4], %s1159_s26 }
 0x2cf   : > { %p1332_p4 = pneg %p1331_p3 }
 0x2d1   : > { %1512 = dma.done.wait (%p1332_p4), %s1160_s20, 1024  }
 0x2d2   : > { %1514 = vsyncadd (%p1332_p4), %s1160_s20, 4294966272  ;;  %s1170_s21 = scalar_lea.sflag [#allocation7], %s1159_s26 }
 0x2d3   : > { %1516 = dma.done.wait (%p1332_p4), %s1170_s21, 512  }
 0x2d4   : > { %1518 = vsyncadd (%p1332_p4), %s1170_s21, 4294966784  ;;  %s1951_s16 = sld [smem:[#allocation12_spill]]  ;;  %s1954_s13 = smov %s1525_s14 }
 0x2d5   : > { %s1952_s30 = sld [smem:[#allocation11_spill]] }
 0x2d6   : > { %s1953_s15 = sld [smem:[#allocation13_spill]] }
 0x2da   : > { %p27_p11 = scmp.ge.s32.totalorder %s1951_s16, 4  }
 0x2db   : > { %s1955_s14 = smov %s1952_s30 }
 0x2dc   :  { %29 = sbr.rel (!%p27_p11) target bundleno = 9 (0x9), region = 118 }
 0x2e1   :  { %1176 = vsyncpa [#allocation3], 1 }
 0x2e2   :  { %1178 = vsyncpa [#allocation3 + $0x1], 1 }
 0x2e3   :  { %1179 = vsyncpa [#allocation4], 1 }
 0x2e4   :  { %1181 = vsyncpa [#allocation4 + $0x1], 1 }
 0x2e5   :  { %1182 = vsyncpa [#allocation7], 1 }
 0x2e6   :  { %1184 = vsyncpa [#allocation7 + $0x1], 1 }

</bundles_post_ra>
